<compile_context>
chip_gen: v7x
topology: tpu7x:2x2x1
jax: 0.10.0
libtpu: 0.0.40
codegen_flags: <defaults>
</compile_context>

<pallas_src>
import jax
import jax.numpy as jnp
from jax import lax
from jax.experimental import pallas as pl
from jax.experimental.pallas import tpu as pltpu

# ---- module hyper-parameters (from the PyTorch __init__) -------------------
KH = KW = 13   # avg-pool kernel
PS = 4         # avg-pool stride
PP = 2         # avg-pool padding
CK = 4         # conv-transpose kernel
CS = 4         # conv-transpose stride
CP = 2         # conv-transpose padding
CIN, COUT = 4, 8
KK = CK * CK
LANES = COUT * KK   # 128 -> lane-dense kernel output


def _erf(x):
    # TODO(synk): torch.erf has no guaranteed Mosaic lowering; use the same
    # f32 rational approximation XLA uses: erf(x) ~= x*P(x^2)/Q(x^2), x in [-4,4].
    alpha = (0.00022905065861350646, 0.0034082910107109506,
             0.050955695062380861, 0.18520832239976145, 1.128379143519084)
    beta = (-1.1791602954361697e-07, 2.3547966471313185e-05,
            0.0010179625278914885, 0.014070470171167667,
            0.11098505178285362, 0.49746925110067538, 1.0)
    xc = jnp.clip(x, -4.0, 4.0)
    x2 = xc * xc
    p = x2 * alpha[0] + alpha[1]
    for c in alpha[2:]:
        p = p * x2 + c
    q = x2 * beta[0] + beta[1]
    for c in beta[2:]:
        q = q * x2 + c
    # divide goes to the EUP slot instead of a VPU Newton divide
    return (xc * p) * pl.reciprocal(q, approx=True)


# -------------------- fused kernel: pool + deconv + GELU ---------------------
def _fused_kernel(x_ref, b_ref, w_ref, o_ref):
    xr = x_ref[0]          # (H*W, Cin)      NHWC-flattened image of one batch
    bmat = b_ref[...]      # (Hi*Wi, H*W)    kron(P, Q) / 169 pooling matrix
    w = w_ref[...]         # (Cin+1, 128)    deconv weight with bias as last row

    # AvgPool2d (count_include_pad=True): one matmul, result stays in VMEM
    pool = jnp.dot(bmat, xr, preferred_element_type=jnp.float32)          # (Hi*Wi, Cin)

    # ConvTranspose2d with stride == kernel: per-pixel matmul + bias row
    y = jnp.dot(pool, w[:CIN, :], preferred_element_type=jnp.float32)
    y = y + w[CIN:, :]                                                    # (Hi*Wi, 128)

    # exact GELU:  v7 = (0.5*y) * (erf(y/sqrt(2)) + 1)
    o_ref[0] = (0.5 * y) * (_erf(y * 0.7071067811865476) + 1.0)


def model_forward(x, weight, bias):
    # x: (N, Cin, H, W); weight: (Cin, Cout, CK, CK); bias: (Cout,)
    n, c, h, w = x.shape
    ho = (h + 2 * PP - KH) // PS + 1
    wo = (w + 2 * PP - KW) // PS + 1
    hw = h * w
    howo = ho * wo

    # Pool window matrices on the UNPADDED extent (zeros in the pad contribute
    # nothing; divisor stays KH*KW because count_include_pad=True).
    def win(size_in, size_out):
        idx = jnp.arange(size_in)[None, :]
        o = jnp.arange(size_out)[:, None]
        start = o * PS - PP
        return ((idx >= start) & (idx < start + KH)).astype(jnp.float32)

    pmat = win(h, ho)                                   # (ho, h)
    qmat = win(w, wo)                                   # (wo, w)
    bmat = jnp.kron(pmat, qmat) * (1.0 / (KH * KW))     # (ho*wo, h*w)

    # NHWC-flattened input: one (H*W, Cin) matrix per batch element.
    xr = jnp.transpose(x, (0, 2, 3, 1)).reshape(n, hw, c)

    # Deconv weight as (Cin, Cout*K*K); bias folded in as an extra row.
    w2 = weight.reshape(c, LANES)                       # lane = co*16 + kh*4 + kw
    w_aug = jnp.concatenate([w2, jnp.repeat(bias, KK)[None, :]], axis=0)   # (Cin+1, 128)

    out = pl.pallas_call(
        _fused_kernel,
        out_shape=jax.ShapeDtypeStruct((n, howo, LANES), jnp.float32),
        grid=(n,),
        in_specs=[
            pl.BlockSpec((1, hw, c), lambda i: (i, 0, 0)),
            pl.BlockSpec((howo, hw), lambda i: (0, 0)),
            pl.BlockSpec((c + 1, LANES), lambda i: (0, 0)),
        ],
        out_specs=pl.BlockSpec((1, howo, LANES), lambda i: (i, 0, 0)),
        compiler_params=pltpu.CompilerParams(dimension_semantics=("parallel",)),
    )(xr, bmat, w_aug)

    # stride == kernel -> non-overlapping scatter: pure layout glue in XLA,
    # then ConvTranspose2d padding=2 crops 2 from each spatial border.
    full = out.reshape(n, ho, wo, COUT, CK, CK)
    full = jnp.transpose(full, (0, 3, 1, 4, 2, 5)).reshape(n, COUT, ho * CK, wo * CK)
    return full[:, :, CP:ho * CK - CP, CP:wo * CK - CP]


# ------------------------------------ main -----------------------------------
if __name__ == "__main__":
    key = jax.random.PRNGKey(0)
    kx, kw, kb = jax.random.split(key, 3)

    N, C, H, W = 2, 4, 32, 32
    x = jax.random.normal(kx, (N, C, H, W), jnp.float32)

    bound = 1.0 / (CIN * CK * CK) ** 0.5
    weight = jax.random.uniform(kw, (CIN, COUT, CK, CK), jnp.float32, -bound, bound)
    bias = jax.random.uniform(kb, (COUT,), jnp.float32, -bound, bound)

    out = jax.jit(model_forward)(x, weight, bias)
    out = jax.block_until_ready(out)

    # ---- pure-JAX reference (outside Pallas) for a sanity check ----
    xp = jnp.pad(x, ((0, 0), (0, 0), (PP, PP), (PP, PP)))
    v1_ref = lax.reduce_window(xp, 0.0, lax.add,
                               (1, 1, KH, KW), (1, 1, PS, PS), 'VALID') / (KH * KW)
    w_conv = jnp.transpose(weight[:, :, ::-1, ::-1], (1, 0, 2, 3))  # (Cout, Cin, k, k)
    v2_ref = lax.conv_general_dilated(
        v1_ref, w_conv, window_strides=(1, 1),
        padding=((CK - 1 - CP, CK - 1 - CP),) * 2,
        lhs_dilation=(CS, CS),
        dimension_numbers=('NCHW', 'OIHW', 'NCHW')) + bias[None, :, None, None]
    ref = 0.5 * v2_ref * (1.0 + jax.scipy.special.erf(v2_ref * 0.7071067811865476))

    assert out.shape == ref.shape, (out.shape, ref.shape)
    err = float(jnp.max(jnp.abs(out - ref)))
    assert err < 2e-3, f"max abs err too large: {err}"

    print("KERNEL_OK")
</pallas_src>

<mosaic_0001>
module attributes {stable_mosaic.version = 11 : i64} {
  func.func @_fused_kernel(%arg0: i32, %arg1: memref<1x1024x4xf32, #tpu.memory_space<vmem>>, %arg2: memref<36x1024xf32, #tpu.memory_space<vmem>>, %arg3: memref<5x128xf32, #tpu.memory_space<vmem>>, %arg4: memref<1x36x128xf32, #tpu.memory_space<vmem>>) attributes {dimension_semantics = [#tpu.dimension_semantics<parallel>], iteration_bounds = array<i64: 2>, scalar_prefetch = 0 : i64, scratch_operands = 0 : i64, tpu.core_type = #tpu.core_type<tc>, window_params = [{transform_indices = @transform_0, window_bounds = array<i64: 1, 1024, 4>}, {pipeline_mode = #tpu.pipeline_mode<synchronous>, transform_indices = @transform_1, window_bounds = array<i64: 36, 1024>}, {pipeline_mode = #tpu.pipeline_mode<synchronous>, transform_indices = @transform_2, window_bounds = array<i64: 5, 128>}, {transform_indices = @transform_3, window_bounds = array<i64: 1, 36, 128>}]} {
    %c0 = arith.constant 0 : index
    %c0_0 = arith.constant 0 : index
    %c0_1 = arith.constant 0 : index
    %0 = vector.load %arg1[%c0, %c0_0, %c0_1] : memref<1x1024x4xf32, #tpu.memory_space<vmem>>, vector<1x1024x4xf32>
    %1 = vector.shape_cast %0 : vector<1x1024x4xf32> to vector<1024x4xf32>
    %c0_2 = arith.constant 0 : index
    %c0_3 = arith.constant 0 : index
    %2 = vector.load %arg2[%c0_2, %c0_3] : memref<36x1024xf32, #tpu.memory_space<vmem>>, vector<36x1024xf32>
    %c0_4 = arith.constant 0 : index
    %c0_5 = arith.constant 0 : index
    %3 = vector.load %arg3[%c0_4, %c0_5] : memref<5x128xf32, #tpu.memory_space<vmem>>, vector<5x128xf32>
    %cst = arith.constant dense<0.000000e+00> : vector<36x4xf32>
    %4 = tpu.matmul %2, %1, %cst {dimension_numbers = #tpu.dot_dimension_numbers<[1], [0], [0], [1], [0, 0, 1, 1], [], []>} : vector<36x1024xf32>, vector<1024x4xf32>, vector<36x4xf32> -> vector<36x4xf32>
    %5 = vector.extract_strided_slice %3 {offsets = [0, 0], sizes = [4, 128], strides = [1, 1]} : vector<5x128xf32> to vector<4x128xf32>
    %cst_6 = arith.constant dense<0.000000e+00> : vector<36x128xf32>
    %6 = tpu.matmul %4, %5, %cst_6 {dimension_numbers = #tpu.dot_dimension_numbers<[1], [0], [0], [1], [0, 0, 1, 1], [], []>} : vector<36x4xf32>, vector<4x128xf32>, vector<36x128xf32> -> vector<36x128xf32>
    %7 = vector.extract_strided_slice %3 {offsets = [4, 0], sizes = [1, 128], strides = [1, 1]} : vector<5x128xf32> to vector<1x128xf32>
    %8 = vector.broadcast %7 : vector<1x128xf32> to vector<36x128xf32>
    %9 = arith.addf %6, %8 : vector<36x128xf32>
    %cst_7 = arith.constant 5.000000e-01 : f32
    %10 = vector.broadcast %cst_7 : f32 to vector<36x128xf32>
    %11 = arith.mulf %10, %9 : vector<36x128xf32>
    %cst_8 = arith.constant 0.707106769 : f32
    %12 = vector.broadcast %cst_8 : f32 to vector<36x128xf32>
    %13 = arith.mulf %9, %12 : vector<36x128xf32>
    %cst_9 = arith.constant -4.000000e+00 : f32
    %cst_10 = arith.constant 4.000000e+00 : f32
    %14 = vector.broadcast %cst_9 : f32 to vector<36x128xf32>
    %15 = arith.maximumf %14, %13 : vector<36x128xf32>
    %16 = vector.broadcast %cst_10 : f32 to vector<36x128xf32>
    %17 = arith.minimumf %16, %15 : vector<36x128xf32>
    %18 = arith.mulf %17, %17 : vector<36x128xf32>
    %cst_11 = arith.constant 2.29050653E-4 : f32
    %19 = vector.broadcast %cst_11 : f32 to vector<36x128xf32>
    %20 = arith.mulf %18, %19 : vector<36x128xf32>
    %cst_12 = arith.constant 0.00340829091 : f32
    %21 = vector.broadcast %cst_12 : f32 to vector<36x128xf32>
    %22 = arith.addf %20, %21 : vector<36x128xf32>
    %23 = arith.mulf %22, %18 : vector<36x128xf32>
    %cst_13 = arith.constant 0.0509556942 : f32
    %24 = vector.broadcast %cst_13 : f32 to vector<36x128xf32>
    %25 = arith.addf %23, %24 : vector<36x128xf32>
    %26 = arith.mulf %25, %18 : vector<36x128xf32>
    %cst_14 = arith.constant 0.185208321 : f32
    %27 = vector.broadcast %cst_14 : f32 to vector<36x128xf32>
    %28 = arith.addf %26, %27 : vector<36x128xf32>
    %29 = arith.mulf %28, %18 : vector<36x128xf32>
    %cst_15 = arith.constant 1.12837911 : f32
    %30 = vector.broadcast %cst_15 : f32 to vector<36x128xf32>
    %31 = arith.addf %29, %30 : vector<36x128xf32>
    %cst_16 = arith.constant -1.17916031E-7 : f32
    %32 = vector.broadcast %cst_16 : f32 to vector<36x128xf32>
    %33 = arith.mulf %18, %32 : vector<36x128xf32>
    %cst_17 = arith.constant 2.35479656E-5 : f32
    %34 = vector.broadcast %cst_17 : f32 to vector<36x128xf32>
    %35 = arith.addf %33, %34 : vector<36x128xf32>
    %36 = arith.mulf %35, %18 : vector<36x128xf32>
    %cst_18 = arith.constant 0.00101796258 : f32
    %37 = vector.broadcast %cst_18 : f32 to vector<36x128xf32>
    %38 = arith.addf %36, %37 : vector<36x128xf32>
    %39 = arith.mulf %38, %18 : vector<36x128xf32>
    %cst_19 = arith.constant 0.0140704699 : f32
    %40 = vector.broadcast %cst_19 : f32 to vector<36x128xf32>
    %41 = arith.addf %39, %40 : vector<36x128xf32>
    %42 = arith.mulf %41, %18 : vector<36x128xf32>
    %cst_20 = arith.constant 0.110985048 : f32
    %43 = vector.broadcast %cst_20 : f32 to vector<36x128xf32>
    %44 = arith.addf %42, %43 : vector<36x128xf32>
    %45 = arith.mulf %44, %18 : vector<36x128xf32>
    %cst_21 = arith.constant 0.497469246 : f32
    %46 = vector.broadcast %cst_21 : f32 to vector<36x128xf32>
    %47 = arith.addf %45, %46 : vector<36x128xf32>
    %48 = arith.mulf %47, %18 : vector<36x128xf32>
    %cst_22 = arith.constant 1.000000e+00 : f32
    %49 = vector.broadcast %cst_22 : f32 to vector<36x128xf32>
    %50 = arith.addf %48, %49 : vector<36x128xf32>
    %51 = arith.mulf %17, %31 : vector<36x128xf32>
    %52 = tpu.reciprocal %50 {approx = true} : vector<36x128xf32> -> vector<36x128xf32>
    %53 = arith.mulf %51, %52 : vector<36x128xf32>
    %cst_23 = arith.constant 1.000000e+00 : f32
    %54 = vector.broadcast %cst_23 : f32 to vector<36x128xf32>
    %55 = arith.addf %53, %54 : vector<36x128xf32>
    %56 = arith.mulf %11, %55 : vector<36x128xf32>
    %c0_24 = arith.constant 0 : index
    %c0_25 = arith.constant 0 : index
    %c0_26 = arith.constant 0 : index
    %57 = vector.load %arg4[%c0_24, %c0_25, %c0_26] : memref<1x36x128xf32, #tpu.memory_space<vmem>>, vector<1x36x128xf32>
    %58 = vector.shape_cast %57 : vector<1x36x128xf32> to vector<36x128xf32>
    %59 = vector.shape_cast %56 : vector<36x128xf32> to vector<1x36x128xf32>
    tpu.vector_store %arg4[%c0_24, %c0_25, %c0_26], %59 {strides = array<i32>} : memref<1x36x128xf32, #tpu.memory_space<vmem>>, vector<1x36x128xf32>,
    return
  }
  func.func @transform_0(%arg0: i32) -> (i32, i32, i32) {
    %c0_i32 = arith.constant 0 : i32
    %c0_i32_0 = arith.constant 0 : i32
    %c0_i32_1 = arith.constant 0 : i32
    return %arg0, %c0_i32, %c0_i32_0 : i32, i32, i32
  }
  func.func @transform_1(%arg0: i32) -> (i32, i32) {
    %c0_i32 = arith.constant 0 : i32
    %c0_i32_0 = arith.constant 0 : i32
    %c0_i32_1 = arith.constant 0 : i32
    return %c0_i32, %c0_i32_0 : i32, i32
  }
  func.func @transform_2(%arg0: i32) -> (i32, i32) {
    %c0_i32 = arith.constant 0 : i32
    %c0_i32_0 = arith.constant 0 : i32
    %c0_i32_1 = arith.constant 0 : i32
    return %c0_i32, %c0_i32_0 : i32, i32
  }
  func.func @transform_3(%arg0: i32) -> (i32, i32, i32) {
    %c0_i32 = arith.constant 0 : i32
    %c0_i32_0 = arith.constant 0 : i32
    %c0_i32_1 = arith.constant 0 : i32
    return %arg0, %c0_i32, %c0_i32_0 : i32, i32, i32
  }
}

</mosaic_0001>

<bundles_post_ra>
// kernel: model_forward.1
= control target key start
LH: loop header
LB: loop body
LE: loop exit
PB: predicated region body
PF: predicated region fallthrough
CT: control target
= control target key end

     0   :  { %s1438_s12 = smov 0   ;;  %s1846_s0 = inlined_call_operand.vmem [shape: f32[2,1024,4], index: 0, kind: input, shape index: {}]   ;;  %s1847_s1 = inlined_call_operand.vmem [shape: f32[36,1024], index: 1, kind: input, shape index: {}]   ;;  %s1848_s2 = inlined_call_operand.vmem [shape: f32[5,128], index: 2, kind: input, shape index: {}]   ;;  %s1849_s3 = inlined_call_operand.vmem [shape: f32[2,36,128], index: 3, kind: output, shape index: {}]  }
   0x1 LB: > { %s1024_s13 = sadd.s32 4294967295, %s1414_s12   ;;  %p1028_p0 = scmp.ge.s32.totalorder %s1414_s12, 1  ;;  %s1414_s12 = sphi %s1438_s12, %s13_s12  }
   0x2   : > { %p137_p1 = scmp.lt.s32.totalorder %s1414_s12, 3 }
   0x4   : > { %p138_p2 = pnand %p1028_p0, %p137_p1 }
   0x5   : > { %p161_p3 = scmp.lt.s32.totalorder (!%p138_p2), %s1024_s13, 1  ;;  %v300_v0 = vld [vmem:[%s1847_s1 + $0x8] sm:$0xff] (!%p138_p2)  ;;  %v302_v1 = vld [vmem:[%s1847_s1 + $0x18] sm:$0xff] (!%p138_p2)  ;;  %vm720_vm0 = vcmask (!%p138_p2), 1043456   ;;  %vm1417_vm1 = vmmov (!%p138_p2), 0   ;;  %vm704_vm2 = vcmask (!%p138_p2), 31744  }
   0x6   : > { %141 = sbr.rel (%p138_p2) target bundleno = 582 (0x246), region = 32  ;;  %404 = vmatprep.mubr.f32.mxu0 (!%p138_p2), %v300_v0  ;;  %494 = vmatprep.mubr.f32.mxu1 (!%p138_p2), %v302_v1 }
   0xd   : > { %s1851_s13 = smov (!%p161_p3, %s1024_s13), 1 }
   0xe   : > { %s1045_s18 = sshll.u32 %s1851_s13, 10  ;;  %s1387_s26 = smul.u32 40, %s1851_s13 }
   0xf   : > { %s1458_s21 = scalar_lea.vmem %s1846_s0, %s1045_s18 }
  0x10   : > { %v187_v2 = vld [vmem:[%s1458_s21 + $0x80] sm:$0xff]  ;;  %v188_v3 = vld [vmem:[%s1458_s21 + $0x88] sm:$0xff]  ;;  %v189_v13 = vld [vmem:[%s1458_s21 + $0x90] sm:$0xff]  ;;  %s1821_s13 = scalar_lea.vmem %s1849_s3, %s1387_s26 }
  0x11   : > { %v219_v4 = vld [vmem:[%s1458_s21 + $0x180] sm:$0xff]  ;;  %v1257_v5 = vpack.c.bf16 %v188_v3, %v187_v2  ;;  %v220_v6 = vld [vmem:[%s1458_s21 + $0x188] sm:$0xff]  ;;  %v190_v15 = vld [vmem:[%s1458_s21 + $0x98] sm:$0xff] }
  0x12   : > { %v171_v7 = vld [vmem:[%s1458_s21] sm:$0xff]  ;;  %v172_v8 = vld [vmem:[%s1458_s21 + $0x8] sm:$0xff]  ;;  %v1289_v9 = vpack.c.bf16 %v220_v6, %v219_v4  ;;  %v221_v16 = vld [vmem:[%s1458_s21 + $0x190] sm:$0xff]  ;;  %v1261_v18 = vpack.c.bf16 %v190_v15, %v189_v13 }
  0x13   : > { %v1259_v10 = vpack.c.bf16 %v172_v8, %v171_v7  ;;  %v203_v11 = vld [vmem:[%s1458_s21 + $0x100] sm:$0xff]  ;;  %v204_v12 = vld [vmem:[%s1458_s21 + $0x108] sm:$0xff]  ;;  %1258 = vmatprep.subr.bf16.mxu0 %v1257_v5  ;;  %v222_v17 = vld [vmem:[%s1458_s21 + $0x198] sm:$0xff] }
  0x14   : > { %v1291_v14 = vpack.c.bf16 %v204_v12, %v203_v11  ;;  %1290 = vmatprep.subr.bf16.mxu1 %v1289_v9  ;;  %v1293_v19 = vpack.c.bf16 %v222_v17, %v221_v16  ;;  %v173_v20 = vld [vmem:[%s1458_s21 + $0x10] sm:$0xff]  ;;  %v174_v21 = vld [vmem:[%s1458_s21 + $0x18] sm:$0xff]  ;;  %v191_v25 = vld [vmem:[%s1458_s21 + $0xa0] sm:$0xff] }
  0x15   : > { %1260 = vmatpush3.bf16.msra.mxu0 %v1259_v10  ;;  %v205_v22 = vld [vmem:[%s1458_s21 + $0x110] sm:$0xff]  ;;  %v1263_v23 = vpack.c.bf16 %v174_v21, %v173_v20  ;;  %v206_v24 = vld [vmem:[%s1458_s21 + $0x118] sm:$0xff]  ;;  %v192_v26 = vld [vmem:[%s1458_s21 + $0xa8] sm:$0xff] }
  0x16   : > { %1292 = vmatpush3.bf16.msra.mxu1 %v1291_v14  ;;  %1262 = vmatprep.subr.bf16.mxu0 %v1261_v18  ;;  %v1295_v27 = vpack.c.bf16 %v206_v24, %v205_v22  ;;  %v1265_v28 = vpack.c.bf16 %v192_v26, %v191_v25  ;;  %v223_v29 = vld [vmem:[%s1458_s21 + $0x1a0] sm:$0xff]  ;;  %v224_v30 = vld [vmem:[%s1458_s21 + $0x1a8] sm:$0xff]  ;;  %v193_v37 = vld [vmem:[%s1458_s21 + $0xb0] sm:$0xff] }
  0x17   : > { %1294 = vmatprep.subr.bf16.mxu1 %v1293_v19  ;;  %v175_v31 = vld [vmem:[%s1458_s21 + $0x20] sm:$0xff]  ;;  %v1297_v32 = vpack.c.bf16 %v224_v30, %v223_v29  ;;  %v176_v33 = vld [vmem:[%s1458_s21 + $0x28] sm:$0xff]  ;;  %v194_v38 = vld [vmem:[%s1458_s21 + $0xb8] sm:$0xff] }
  0x18   : > { %v207_v34 = vld [vmem:[%s1458_s21 + $0x120] sm:$0xff]  ;;  %v208_v35 = vld [vmem:[%s1458_s21 + $0x128] sm:$0xff]  ;;  %v1267_v36 = vpack.c.bf16 %v176_v33, %v175_v31  ;;  %v225_v39 = vld [vmem:[%s1458_s21 + $0x1b0] sm:$0xff]  ;;  %v1269_v41 = vpack.c.bf16 %v194_v38, %v193_v37 }
  0x19   : > { %1264 = vmatpush3.bf16.msra.mxu0 %v1263_v23  ;;  %v1299_v40 = vpack.c.bf16 %v208_v35, %v207_v34  ;;  %v226_v42 = vld [vmem:[%s1458_s21 + $0x1b8] sm:$0xff]  ;;  %v177_v43 = vld [vmem:[%s1458_s21 + $0x30] sm:$0xff]  ;;  %v195_v48 = vld [vmem:[%s1458_s21 + $0xc0] sm:$0xff] }
  0x1a   : > { %1296 = vmatpush3.bf16.msra.mxu1 %v1295_v27  ;;  %1266 = vmatprep.subr.bf16.mxu0 %v1265_v28  ;;  %v178_v44 = vld [vmem:[%s1458_s21 + $0x38] sm:$0xff]  ;;  %v1301_v45 = vpack.c.bf16 %v226_v42, %v225_v39  ;;  %v209_v46 = vld [vmem:[%s1458_s21 + $0x130] sm:$0xff]  ;;  %v196_v49 = vld [vmem:[%s1458_s21 + $0xc8] sm:$0xff] }
  0x1b   : > { %1298 = vmatprep.subr.bf16.mxu1 %v1297_v32  ;;  %v210_v47 = vld [vmem:[%s1458_s21 + $0x138] sm:$0xff]  ;;  %v227_v50 = vld [vmem:[%s1458_s21 + $0x1c0] sm:$0xff]  ;;  %v228_v51 = vld [vmem:[%s1458_s21 + $0x1c8] sm:$0xff]  ;;  %v1271_v52 = vpack.c.bf16 %v178_v44, %v177_v43  ;;  %v1273_v54 = vpack.c.bf16 %v196_v49, %v195_v48 }
  0x1c   : > { %v1303_v53 = vpack.c.bf16 %v210_v47, %v209_v46  ;;  %v179_v55 = vld [vmem:[%s1458_s21 + $0x40] sm:$0xff]  ;;  %v180_v56 = vld [vmem:[%s1458_s21 + $0x48] sm:$0xff]  ;;  %v1305_v58 = vpack.c.bf16 %v228_v51, %v227_v50  ;;  %v197_v60 = vld [vmem:[%s1458_s21 + $0xd0] sm:$0xff] }
  0x1d   : > { %1268 = vmatpush3.bf16.msra.mxu0 %v1267_v36  ;;  %v211_v57 = vld [vmem:[%s1458_s21 + $0x140] sm:$0xff]  ;;  %v212_v59 = vld [vmem:[%s1458_s21 + $0x148] sm:$0xff]  ;;  %v198_v61 = vld [vmem:[%s1458_s21 + $0xd8] sm:$0xff]  ;;  %v1275_v0 = vpack.c.bf16 %v180_v56, %v179_v55 }
  0x1e   : > { %1300 = vmatpush3.bf16.msra.mxu1 %v1299_v40  ;;  %1270 = vmatprep.subr.bf16.mxu0 %v1269_v41  ;;  %v229_v62 = vld [vmem:[%s1458_s21 + $0x1d0] sm:$0xff]  ;;  %v230_v63 = vld [vmem:[%s1458_s21 + $0x1d8] sm:$0xff]  ;;  %v1307_v1 = vpack.c.bf16 %v212_v59, %v211_v57  ;;  %v1277_v2 = vpack.c.bf16 %v198_v61, %v197_v60  ;;  %v199_v8 = vld [vmem:[%s1458_s21 + $0xe0] sm:$0xff] }
  0x1f   : > { %1302 = vmatprep.subr.bf16.mxu1 %v1301_v45  ;;  %v181_v3 = vld [vmem:[%s1458_s21 + $0x50] sm:$0xff]  ;;  %v182_v4 = vld [vmem:[%s1458_s21 + $0x58] sm:$0xff]  ;;  %v1309_v6 = vpack.c.bf16 %v230_v63, %v229_v62  ;;  %v200_v9 = vld [vmem:[%s1458_s21 + $0xe8] sm:$0xff] }
  0x20   : > { %v213_v5 = vld [vmem:[%s1458_s21 + $0x150] sm:$0xff]  ;;  %v214_v7 = vld [vmem:[%s1458_s21 + $0x158] sm:$0xff]  ;;  %v231_v10 = vld [vmem:[%s1458_s21 + $0x1e0] sm:$0xff]  ;;  %v1279_v12 = vpack.c.bf16 %v182_v4, %v181_v3  ;;  %v1281_v14 = vpack.c.bf16 %v200_v9, %v199_v8 }
  0x21   : > { %1272 = vmatpush3.bf16.msra.mxu0 %v1271_v52  ;;  %v232_v11 = vld [vmem:[%s1458_s21 + $0x1e8] sm:$0xff]  ;;  %v1311_v13 = vpack.c.bf16 %v214_v7, %v213_v5  ;;  %v183_v15 = vld [vmem:[%s1458_s21 + $0x60] sm:$0xff]  ;;  %v201_v20 = vld [vmem:[%s1458_s21 + $0xf0] sm:$0xff] }
  0x22   : > { %1304 = vmatpush3.bf16.msra.mxu1 %v1303_v53  ;;  %1274 = vmatprep.subr.bf16.mxu0 %v1273_v54  ;;  %v184_v16 = vld [vmem:[%s1458_s21 + $0x68] sm:$0xff]  ;;  %v215_v17 = vld [vmem:[%s1458_s21 + $0x160] sm:$0xff]  ;;  %v1313_v18 = vpack.c.bf16 %v232_v11, %v231_v10  ;;  %v202_v21 = vld [vmem:[%s1458_s21 + $0xf8] sm:$0xff] }
  0x23   : > { %1306 = vmatprep.subr.bf16.mxu1 %v1305_v58  ;;  %v216_v19 = vld [vmem:[%s1458_s21 + $0x168] sm:$0xff]  ;;  %v233_v22 = vld [vmem:[%s1458_s21 + $0x1f0] sm:$0xff]  ;;  %v234_v23 = vld [vmem:[%s1458_s21 + $0x1f8] sm:$0xff]  ;;  %v1283_v24 = vpack.c.bf16 %v184_v16, %v183_v15  ;;  %v1285_v26 = vpack.c.bf16 %v202_v21, %v201_v20 }
  0x24   : > { %v1315_v25 = vpack.c.bf16 %v216_v19, %v215_v17  ;;  %v185_v27 = vld [vmem:[%s1458_s21 + $0x70] sm:$0xff]  ;;  %v186_v28 = vld [vmem:[%s1458_s21 + $0x78] sm:$0xff]  ;;  %v1317_v30 = vpack.c.bf16 %v234_v23, %v233_v22  ;;  %v251_v32 = vld [vmem:[%s1458_s21 + $0x280] sm:$0xff] }
  0x25   : > { %1276 = vmatpush3.bf16.msra.mxu0 %v1275_v0  ;;  %v217_v29 = vld [vmem:[%s1458_s21 + $0x170] sm:$0xff]  ;;  %v218_v31 = vld [vmem:[%s1458_s21 + $0x178] sm:$0xff]  ;;  %v252_v33 = vld [vmem:[%s1458_s21 + $0x288] sm:$0xff]  ;;  %v1287_v36 = vpack.c.bf16 %v186_v28, %v185_v27 }
  0x26   : > { %1308 = vmatpush3.bf16.msra.mxu1 %v1307_v1  ;;  %1278 = vmatprep.subr.bf16.mxu0 %v1277_v2  ;;  %v283_v34 = vld [vmem:[%s1458_s21 + $0x380] sm:$0xff]  ;;  %v284_v35 = vld [vmem:[%s1458_s21 + $0x388] sm:$0xff]  ;;  %v1319_v37 = vpack.c.bf16 %v218_v31, %v217_v29  ;;  %v1321_v38 = vpack.c.bf16 %v252_v33, %v251_v32  ;;  %v253_v44 = vld [vmem:[%s1458_s21 + $0x290] sm:$0xff] }
  0x27   : > { %1310 = vmatprep.subr.bf16.mxu1 %v1309_v6  ;;  %v235_v39 = vld [vmem:[%s1458_s21 + $0x200] sm:$0xff]  ;;  %v236_v40 = vld [vmem:[%s1458_s21 + $0x208] sm:$0xff]  ;;  %v1353_v42 = vpack.c.bf16 %v284_v35, %v283_v34  ;;  %v254_v45 = vld [vmem:[%s1458_s21 + $0x298] sm:$0xff] }
  0x28   : > { %v267_v41 = vld [vmem:[%s1458_s21 + $0x300] sm:$0xff]  ;;  %v268_v43 = vld [vmem:[%s1458_s21 + $0x308] sm:$0xff]  ;;  %v285_v46 = vld [vmem:[%s1458_s21 + $0x390] sm:$0xff]  ;;  %v1323_v50 = vpack.c.bf16 %v236_v40, %v235_v39  ;;  %v1325_v52 = vpack.c.bf16 %v254_v45, %v253_v44 }
  0x29   : > { %1280 = vmatpush3.bf16.msra.mxu0 %v1279_v12  ;;  %v286_v47 = vld [vmem:[%s1458_s21 + $0x398] sm:$0xff]  ;;  %v299_v48 = vld [vmem:[%s1847_s1] sm:$0xff]  ;;  %v301_v49 = vld [vmem:[%s1847_s1 + $0x10] sm:$0xff]  ;;  %v1355_v51 = vpack.c.bf16 %v268_v43, %v267_v41 }
  0x2a   : > { %1312 = vmatpush3.bf16.msra.mxu1 %v1311_v13  ;;  %1282 = vmatprep.subr.bf16.mxu0 %v1281_v14  ;;  %v237_v53 = vld [vmem:[%s1458_s21 + $0x210] sm:$0xff]  ;;  %v238_v54 = vld [vmem:[%s1458_s21 + $0x218] sm:$0xff]  ;;  %v1357_v56 = vpack.c.bf16 %v286_v47, %v285_v46  ;;  %v255_v58 = vld [vmem:[%s1458_s21 + $0x2a0] sm:$0xff] }
  0x2b   : > { %1314 = vmatprep.subr.bf16.mxu1 %v1313_v18  ;;  %v269_v55 = vld [vmem:[%s1458_s21 + $0x310] sm:$0xff]  ;;  %v270_v57 = vld [vmem:[%s1458_s21 + $0x318] sm:$0xff]  ;;  %v256_v59 = vld [vmem:[%s1458_s21 + $0x2a8] sm:$0xff]  ;;  %v1327_v63 = vpack.c.bf16 %v238_v54, %v237_v53 }
  0x2c   : > { %v287_v60 = vld [vmem:[%s1458_s21 + $0x3a0] sm:$0xff]  ;;  %v288_v61 = vld [vmem:[%s1458_s21 + $0x3a8] sm:$0xff]  ;;  %v310_v0 = vld [vmem:[%s1847_s1 + $0x58] sm:$0xff]  ;;  %v1359_v3 = vpack.c.bf16 %v270_v57, %v269_v55  ;;  %v1329_v4 = vpack.c.bf16 %v256_v59, %v255_v58 }
  0x2d   : > { %1284 = vmatpush3.bf16.msra.mxu0 %v1283_v24  ;;  %v308_v62 = vld [vmem:[%s1847_s1 + $0x48] sm:$0xff]  ;;  %v307_v1 = vld [vmem:[%s1847_s1 + $0x40] sm:$0xff]  ;;  %v309_v2 = vld [vmem:[%s1847_s1 + $0x50] sm:$0xff]  ;;  %v1361_v8 = vpack.c.bf16 %v288_v61, %v287_v60 }
  0x2e   : > { %1316 = vmatpush3.bf16.msra.mxu1 %v1315_v25  ;;  %1286 = vmatprep.subr.bf16.mxu0 %v1285_v26  ;;  %v239_v5 = vld [vmem:[%s1458_s21 + $0x220] sm:$0xff]  ;;  %v240_v6 = vld [vmem:[%s1458_s21 + $0x228] sm:$0xff]  ;;  %v257_v10 = vld [vmem:[%s1458_s21 + $0x2b0] sm:$0xff] }
  0x2f   : > { %1318 = vmatprep.subr.bf16.mxu1 %v1317_v30  ;;  %v271_v7 = vld [vmem:[%s1458_s21 + $0x320] sm:$0xff]  ;;  %v272_v9 = vld [vmem:[%s1458_s21 + $0x328] sm:$0xff]  ;;  %v258_v11 = vld [vmem:[%s1458_s21 + $0x2b8] sm:$0xff]  ;;  %v1331_v15 = vpack.c.bf16 %v240_v6, %v239_v5 }
  0x30   : > { %v289_v12 = vld [vmem:[%s1458_s21 + $0x3b0] sm:$0xff]  ;;  %v290_v13 = vld [vmem:[%s1458_s21 + $0x3b8] sm:$0xff]  ;;  %v316_v14 = vld [vmem:[%s1847_s1 + $0x88] sm:$0xff]  ;;  %v1363_v19 = vpack.c.bf16 %v272_v9, %v271_v7  ;;  %v1333_v20 = vpack.c.bf16 %v258_v11, %v257_v10 }
  0x31   : > { %1288 = vmatpush3.bf16.msra.mxu0 %v1287_v36  ;;  %v318_v16 = vld [vmem:[%s1847_s1 + $0x98] sm:$0xff]  ;;  %v315_v17 = vld [vmem:[%s1847_s1 + $0x80] sm:$0xff]  ;;  %v317_v18 = vld [vmem:[%s1847_s1 + $0x90] sm:$0xff]  ;;  %v1365_v24 = vpack.c.bf16 %v290_v13, %v289_v12 }
  0x32   : > { %1320 = vmatpush3.bf16.msra.mxu1 %v1319_v37  ;;  %1322 = vmatprep.subr.bf16.mxu0 %v1321_v38  ;;  %v241_v21 = vld [vmem:[%s1458_s21 + $0x230] sm:$0xff]  ;;  %v242_v22 = vld [vmem:[%s1458_s21 + $0x238] sm:$0xff]  ;;  %v259_v26 = vld [vmem:[%s1458_s21 + $0x2c0] sm:$0xff] }
  0x33   : > { %1354 = vmatprep.subr.bf16.mxu1 %v1353_v42  ;;  %v273_v23 = vld [vmem:[%s1458_s21 + $0x330] sm:$0xff]  ;;  %v274_v25 = vld [vmem:[%s1458_s21 + $0x338] sm:$0xff]  ;;  %v260_v27 = vld [vmem:[%s1458_s21 + $0x2c8] sm:$0xff]  ;;  %v1335_v31 = vpack.c.bf16 %v242_v22, %v241_v21 }
  0x34   : > { %405 = vmatmul.mubr.f32.vlgmr.msra.gmra.mrb[0].mxu0 %v299_v48  ;;  %v291_v28 = vld [vmem:[%s1458_s21 + $0x3c0] sm:$0xff]  ;;  %v292_v29 = vld [vmem:[%s1458_s21 + $0x3c8] sm:$0xff]  ;;  %v326_v32 = vld [vmem:[%s1847_s1 + $0xd8] sm:$0xff]  ;;  %v1367_v35 = vpack.c.bf16 %v274_v25, %v273_v23  ;;  %v1337_v36 = vpack.c.bf16 %v260_v27, %v259_v26 }
  0x35   : > { %495 = vmatmul.mubr.f32.vlgmr.msra.gmra.mrb[0].mxu1 %v301_v49  ;;  %1324 = vmatpush3.bf16.msra.mxu0 %v1323_v50  ;;  %v324_v30 = vld [vmem:[%s1847_s1 + $0xc8] sm:$0xff]  ;;  %v323_v33 = vld [vmem:[%s1847_s1 + $0xc0] sm:$0xff]  ;;  %v325_v34 = vld [vmem:[%s1847_s1 + $0xd0] sm:$0xff]  ;;  %v1369_v40 = vpack.c.bf16 %v292_v29, %v291_v28 }
  0x36   : > { %1356 = vmatpush3.bf16.msra.mxu1 %v1355_v51  ;;  %1326 = vmatprep.subr.bf16.mxu0 %v1325_v52  ;;  %v243_v37 = vld [vmem:[%s1458_s21 + $0x240] sm:$0xff]  ;;  %v244_v38 = vld [vmem:[%s1458_s21 + $0x248] sm:$0xff]  ;;  %v261_v42 = vld [vmem:[%s1458_s21 + $0x2d0] sm:$0xff] }
  0x37   : > { %1358 = vmatprep.subr.bf16.mxu1 %v1357_v56  ;;  %409 = vmatprep.mubr.f32.mxu0 %v308_v62  ;;  %v275_v39 = vld [vmem:[%s1458_s21 + $0x340] sm:$0xff]  ;;  %v276_v41 = vld [vmem:[%s1458_s21 + $0x348] sm:$0xff]  ;;  %v262_v43 = vld [vmem:[%s1458_s21 + $0x2d8] sm:$0xff]  ;;  %v1339_v47 = vpack.c.bf16 %v244_v38, %v243_v37 }
  0x38   : > { %499 = vmatprep.mubr.f32.mxu1 %v310_v0  ;;  %410 = vmatmul.mubr.f32.gmra.mrb[2].mxu0 %v307_v1  ;;  %v293_v44 = vld [vmem:[%s1458_s21 + $0x3d0] sm:$0xff]  ;;  %v294_v45 = vld [vmem:[%s1458_s21 + $0x3d8] sm:$0xff]  ;;  %v332_v46 = vld [vmem:[%s1847_s1 + $0x108] sm:$0xf]  ;;  %v1371_v51 = vpack.c.bf16 %v276_v41, %v275_v39  ;;  %v1341_v52 = vpack.c.bf16 %v262_v43, %v261_v42 }
  0x39   : > { %1328 = vmatpush3.bf16.msra.mxu0 %v1327_v63  ;;  %500 = vmatmul.mubr.f32.gmra.mrb[2].mxu1 %v309_v2  ;;  %v245_v48 = vld [vmem:[%s1458_s21 + $0x250] sm:$0xff]  ;;  %v334_v49 = vld [vmem:[%s1847_s1 + $0x118] sm:$0xf]  ;;  %v331_v50 = vld [vmem:[%s1847_s1 + $0x100] sm:$0xf]  ;;  %v1373_v56 = vpack.c.bf16 %v294_v45, %v293_v44 }
  0x3a   : > { %1360 = vmatpush3.bf16.msra.mxu1 %v1359_v3  ;;  %1330 = vmatprep.subr.bf16.mxu0 %v1329_v4  ;;  %v246_v53 = vld [vmem:[%s1458_s21 + $0x258] sm:$0xff]  ;;  %v277_v54 = vld [vmem:[%s1458_s21 + $0x350] sm:$0xff]  ;;  %v263_v58 = vld [vmem:[%s1458_s21 + $0x2e0] sm:$0xff] }
  0x3b   : > { %1362 = vmatprep.subr.bf16.mxu1 %v1361_v8  ;;  %414 = vmatprep.mubr.f32.mxu0 %v316_v14  ;;  %v333_v55 = vld [vmem:[%s1847_s1 + $0x110] sm:$0xf]  ;;  %v278_v57 = vld [vmem:[%s1458_s21 + $0x358] sm:$0xff]  ;;  %v264_v59 = vld [vmem:[%s1458_s21 + $0x2e8] sm:$0xff]  ;;  %v1343_v63 = vpack.c.bf16 %v246_v53, %v245_v48 }
  0x3c   : > { %504 = vmatprep.mubr.f32.mxu1 %v318_v16  ;;  %415 = vmatmul.mubr.f32.gmra.mrb[4].mxu0 %v315_v17  ;;  %v295_v60 = vld [vmem:[%s1458_s21 + $0x3e0] sm:$0xff]  ;;  %v296_v61 = vld [vmem:[%s1458_s21 + $0x3e8] sm:$0xff]  ;;  %v306_v0 = vld [vmem:[%s1847_s1 + $0x38] sm:$0xff]  ;;  %v1375_v1 = vpack.c.bf16 %v278_v57, %v277_v54  ;;  %v1345_v2 = vpack.c.bf16 %v264_v59, %v263_v58 }
  0x3d   : > { %1332 = vmatpush3.bf16.msra.mxu0 %v1331_v15  ;;  %505 = vmatmul.mubr.f32.gmra.mrb[4].mxu1 %v317_v18  ;;  %v304_v62 = vld [vmem:[%s1847_s1 + $0x28] sm:$0xff]  ;;  %v247_v3 = vld [vmem:[%s1458_s21 + $0x260] sm:$0xff]  ;;  %v1377_v6 = vpack.c.bf16 %v296_v61, %v295_v60  ;;  %v265_v8 = vld [vmem:[%s1458_s21 + $0x2f0] sm:$0xff] }
  0x3e   : > { %1364 = vmatpush3.bf16.msra.mxu1 %v1363_v19  ;;  %1334 = vmatprep.subr.bf16.mxu0 %v1333_v20  ;;  %v248_v4 = vld [vmem:[%s1458_s21 + $0x268] sm:$0xff]  ;;  %v279_v5 = vld [vmem:[%s1458_s21 + $0x360] sm:$0xff]  ;;  %v266_v9 = vld [vmem:[%s1458_s21 + $0x2f8] sm:$0xff] }
  0x3f   : > { %1366 = vmatprep.subr.bf16.mxu1 %v1365_v24  ;;  %419 = vmatprep.mubr.f32.mxu0 %v324_v30  ;;  %v280_v7 = vld [vmem:[%s1458_s21 + $0x368] sm:$0xff]  ;;  %v297_v10 = vld [vmem:[%s1458_s21 + $0x3f0] sm:$0xff]  ;;  %v298_v11 = vld [vmem:[%s1458_s21 + $0x3f8] sm:$0xff]  ;;  %v1347_v12 = vpack.c.bf16 %v248_v4, %v247_v3  ;;  %v1349_v14 = vpack.c.bf16 %v266_v9, %v265_v8 }
  0x40   : > { %509 = vmatprep.mubr.f32.mxu1 %v326_v32  ;;  %420 = vmatmul.mubr.f32.gmra.mrb[6].mxu0 %v323_v33  ;;  %v1379_v13 = vpack.c.bf16 %v280_v7, %v279_v5  ;;  %v249_v15 = vld [vmem:[%s1458_s21 + $0x270] sm:$0xff]  ;;  %v250_v16 = vld [vmem:[%s1458_s21 + $0x278] sm:$0xff]  ;;  %v1381_v17 = vpack.c.bf16 %v298_v11, %v297_v10  ;;  %v303_v22 = vld [vmem:[%s1847_s1 + $0x20] sm:$0xff] }
  0x41   : > { %1336 = vmatpush3.bf16.msra.mxu0 %v1335_v31  ;;  %510 = vmatmul.mubr.f32.gmra.mrb[6].mxu1 %v325_v34  ;;  %v281_v18 = vld [vmem:[%s1458_s21 + $0x370] sm:$0xff]  ;;  %v282_v19 = vld [vmem:[%s1458_s21 + $0x378] sm:$0xff]  ;;  %v1351_v20 = vpack.c.bf16 %v250_v16, %v249_v15  ;;  %v312_v24 = vld [vmem:[%s1847_s1 + $0x68] sm:$0xff] }
  0x42   : > { %1368 = vmatpush3.bf16.msra.mxu1 %v1367_v35  ;;  %1338 = vmatprep.subr.bf16.mxu0 %v1337_v36  ;;  %v1383_v21 = vpack.c.bf16 %v282_v19, %v281_v18  ;;  %v305_v23 = vld [vmem:[%s1847_s1 + $0x30] sm:$0xff]  ;;  %v314_v25 = vld [vmem:[%s1847_s1 + $0x78] sm:$0xff]  ;;  %v311_v26 = vld [vmem:[%s1847_s1 + $0x60] sm:$0xff] }
  0x43   : > { %1370 = vmatprep.subr.bf16.mxu1 %v1369_v40  ;;  %424 = vmatprep.mubr.f32.mxu0 %v332_v46  ;;  %v313_v27 = vld [vmem:[%s1847_s1 + $0x70] sm:$0xff]  ;;  %v320_v28 = vld [vmem:[%s1847_s1 + $0xa8] sm:$0xff]  ;;  %v322_v29 = vld [vmem:[%s1847_s1 + $0xb8] sm:$0xff]  ;;  %v1416_v40 = vmov 0.0  }
  0x44   : > { %514 = vmatprep.mubr.f32.mxu1 %v334_v49  ;;  %425 = vmatmul.mubr.f32.gmra.mrb[8].mxu0 %v331_v50  ;;  %v319_v30 = vld [vmem:[%s1847_s1 + $0xa0] sm:$0xff]  ;;  %v321_v31 = vld [vmem:[%s1847_s1 + $0xb0] sm:$0xff]  ;;  %v328_v32 = vld [vmem:[%s1847_s1 + $0xe8] sm:$0xff] }
  0x45   : > { %1340 = vmatpush3.bf16.msra.mxu0 %v1339_v47  ;;  %515 = vmatmul.mubr.f32.gmra.mrb[8].mxu1 %v333_v55  ;;  %v330_v33 = vld [vmem:[%s1847_s1 + $0xf8] sm:$0xff]  ;;  %v327_v34 = vld [vmem:[%s1847_s1 + $0xe0] sm:$0xff]  ;;  %v329_v35 = vld [vmem:[%s1847_s1 + $0xf0] sm:$0xff] }
  0x46   : > { %1372 = vmatpush3.bf16.msra.mxu1 %v1371_v51  ;;  %1342 = vmatprep.subr.bf16.mxu0 %v1341_v52  ;;  %v336_v36 = vld [vmem:[%s1847_s1 + $0x128] sm:$0xf]  ;;  %v338_v37 = vld [vmem:[%s1847_s1 + $0x138] sm:$0xf]  ;;  %v335_v38 = vld [vmem:[%s1847_s1 + $0x120] sm:$0xf] }
  0x47   : > { %1374 = vmatprep.subr.bf16.mxu1 %v1373_v56  ;;  %584 = vmatprep.mubr.f32.mxu0 %v304_v62  ;;  %v337_v39 = vld [vmem:[%s1847_s1 + $0x130] sm:$0xf]  ;;  %v1707_v41 = vld [vmem:[%s1848_s2] sm:$0x1f] }
  0x48   : > { %674 = vmatprep.mubr.f32.mxu1 %v306_v0 }
  0x49   : > { %1344 = vmatpush3.bf16.msra.mxu0 %v1343_v63 }
  0x4a   : > { %1376 = vmatpush3.bf16.msra.mxu1 %v1375_v1  ;;  %1346 = vmatprep.subr.bf16.mxu0 %v1345_v2 }
  0x4b   : > { %1378 = vmatprep.subr.bf16.mxu1 %v1377_v6 }
  0x4d   : > { %1348 = vmatpush3.bf16.msra.mxu0 %v1347_v12 }
  0x4e   : > { %1380 = vmatpush3.bf16.msra.mxu1 %v1379_v13  ;;  %1350 = vmatprep.subr.bf16.mxu0 %v1349_v14 }
  0x4f   : > { %1382 = vmatprep.subr.bf16.mxu1 %v1381_v17 }
  0x51   : > { %1352 = vmatpush3.bf16.msra.mxu0 %v1351_v20 }
  0x52   : > { %1384 = vmatpush3.bf16.msra.mxu1 %v1383_v21  ;;  %1240 = vmatprep.subr.mxu0 %v1416_v40 }
  0x53   : > { %1385 = vmatprep.subr.mxu1 %v1416_v40 }
  0x54   : > { %585 = vmatmul.mubr.f32.vlgmr.msra.gmra.mrb[10].mxu0 %v303_v22 }
  0x55   : > { %675 = vmatmul.mubr.f32.vlgmr.msra.gmra.mrb[10].mxu1 %v305_v23  ;;  %589 = vmatprep.mubr.f32.mxu0 %v312_v24 }
  0x56   : > { %679 = vmatprep.mubr.f32.mxu1 %v314_v25  ;;  %1241 = vmatpush3.msk.msra.mxu0 %vm720_vm0, %v1707_v41 }
  0x57   : > { %1386 = vmatpush3.msk.msra.mxu1 %vm720_vm0, %v1707_v41 }
  0x58   : > { %590 = vmatmul.mubr.f32.gmra.mrb[12].mxu0 %v311_v26 }
  0x59   : > { %680 = vmatmul.mubr.f32.gmra.mrb[12].mxu1 %v313_v27  ;;  %594 = vmatprep.mubr.f32.mxu0 %v320_v28 }
  0x5a   : > { %684 = vmatprep.mubr.f32.mxu1 %v322_v29 }
  0x5c   : > { %595 = vmatmul.mubr.f32.gmra.mrb[14].mxu0 %v319_v30 }
  0x5d   : > { %685 = vmatmul.mubr.f32.gmra.mrb[14].mxu1 %v321_v31  ;;  %599 = vmatprep.mubr.f32.mxu0 %v328_v32 }
  0x5e   : > { %689 = vmatprep.mubr.f32.mxu1 %v330_v33 }
  0x60   : > { %600 = vmatmul.mubr.f32.gmra.mrb[16].mxu0 %v327_v34 }
  0x61   : > { %690 = vmatmul.mubr.f32.gmra.mrb[16].mxu1 %v329_v35  ;;  %604 = vmatprep.mubr.f32.mxu0 %v336_v36 }
  0x62   : > { %694 = vmatprep.mubr.f32.mxu1 %v338_v37 }
  0x64   : > { %605 = vmatmul.mubr.f32.gmra.mrb[18].mxu0 %v335_v38 }
  0x65   : > { %695 = vmatmul.mubr.f32.gmra.mrb[18].mxu1 %v337_v39  ;;  %1242 = vmatprep.mubr.msk.f32.mxu0 %vm1417_vm1, %v1416_v40 }
  0x66   : > { %1251 = vmatprep.mubr.msk.f32.mxu1 %vm1417_vm1, %v1416_v40 }
 0x107   : > { %v1078_v42 = vpop.f32.mrb[0].mxu0 }
 0x108   : > { %v1125_v43 = vpop.f32.mrb[0].mxu1  ;;  %v1079_v44 = vpop.f32.mrb[1].mxu0 }
 0x109   : > { %v1080_v45 = vadd.f32 %v1079_v44, %v1078_v42  ;;  %v1126_v46 = vpop.f32.mrb[1].mxu1 }
 0x10a   : > { %v1127_v47 = vadd.f32 %v1126_v46, %v1125_v43 }
 0x10b   : > { %v1081_v48 = vpop.f32.mrb[2].mxu0 }
 0x10c   : > { %v497_v49 = vadd.f32 %v1127_v47, %v1080_v45  ;;  %v1128_v50 = vpop.f32.mrb[2].mxu1  ;;  %v1082_v51 = vpop.f32.mrb[3].mxu0 }
 0x10d   : > { %v1083_v52 = vadd.f32 %v1082_v51, %v1081_v48  ;;  %v1129_v53 = vpop.f32.mrb[3].mxu1 }
 0x10e   : > { %v1130_v54 = vadd.f32 %v1129_v53, %v1128_v50 }
 0x10f   : > { %v1084_v55 = vpop.f32.mrb[4].mxu0 }
 0x110   : > { %v502_v56 = vadd.f32 %v1130_v54, %v1083_v52  ;;  %v1131_v57 = vpop.f32.mrb[4].mxu1  ;;  %v1085_v58 = vpop.f32.mrb[5].mxu0 }
 0x111   : > { %v1086_v59 = vadd.f32 %v1085_v58, %v1084_v55  ;;  %v1132_v60 = vpop.f32.mrb[5].mxu1  ;;  %v700_v55 = vlaneseq }
 0x112   : > { %v1133_v61 = vadd.f32 %v1132_v60, %v1131_v57 }
 0x113   : > { %v1087_v62 = vpop.f32.mrb[6].mxu0 }
 0x114   : > { %v507_v63 = vadd.f32 %v1133_v61, %v1086_v59  ;;  %v1134_v0 = vpop.f32.mrb[6].mxu1  ;;  %v1088_v1 = vpop.f32.mrb[7].mxu0 }
 0x115   : > { %v1089_v2 = vadd.f32 %v1088_v1, %v1087_v62  ;;  %v1135_v3 = vpop.f32.mrb[7].mxu1 }
 0x116   : > { %v1136_v4 = vadd.f32 %v1135_v3, %v1134_v0 }
 0x117   : > { %v1090_v5 = vpop.f32.mrb[8].mxu0 }
 0x118   : > { %v512_v6 = vadd.f32 %v1136_v4, %v1089_v2  ;;  %v1137_v7 = vpop.f32.mrb[8].mxu1  ;;  %v1091_v8 = vpop.f32.mrb[9].mxu0 }
 0x119   : > { %v1092_v9 = vadd.f32 %v1091_v8, %v1090_v5  ;;  %v1138_v10 = vpop.f32.mrb[9].mxu1 }
 0x11a   : > { %v1139_v11 = vadd.f32 %v1138_v10, %v1137_v7 }
 0x11c   : > { %v517_v12 = vadd.f32 %v1139_v11, %v1092_v9 }
 0x127   : > { %v1172_v13 = vpop.f32.mrb[10].mxu0 }
 0x128   : > { %v1173_v14 = vpop.f32.mrb[11].mxu0  ;;  %v1219_v15 = vpop.f32.mrb[10].mxu1 }
 0x129   : > { %v1174_v16 = vadd.f32 %v1173_v14, %v1172_v13  ;;  %v1220_v17 = vpop.f32.mrb[11].mxu1 }
 0x12a   : > { %v1221_v18 = vadd.f32 %v1220_v17, %v1219_v15 }
 0x12b   : > { %v587_v19 = vadd.f32 %v1174_v16, %v497_v49  ;;  %v1175_v20 = vpop.f32.mrb[12].mxu0 }
 0x12c   : > { %v1176_v21 = vpop.f32.mrb[13].mxu0  ;;  %v1222_v22 = vpop.f32.mrb[12].mxu1 }
 0x12d   : > { %v677_v23 = vadd.f32 %v1221_v18, %v587_v19  ;;  %v1177_v24 = vadd.f32 %v1176_v21, %v1175_v20  ;;  %v1223_v25 = vpop.f32.mrb[13].mxu1 }
 0x12e   : > { %v1224_v26 = vadd.f32 %v1223_v25, %v1222_v22 }
 0x12f   : > { %v592_v27 = vadd.f32 %v1177_v24, %v502_v56  ;;  %v1178_v28 = vpop.f32.mrb[14].mxu0  ;;  %1243 = vmatmul.mubr.msk.f32.vlgmr.msra.gmra.mrb[20].mxu0 %vm704_vm2, %v677_v23  ;;  %v701_v56 = vshrl.u32 %v700_v55, 7 }
 0x130   : > { %v1179_v29 = vpop.f32.mrb[15].mxu0  ;;  %v1225_v30 = vpop.f32.mrb[14].mxu1  ;;  %1245 = vmatprep.mubr.msk.f32.mxu0 %vm1417_vm1, %v1416_v40 }
 0x131   : > { %v682_v31 = vadd.f32 %v1224_v26, %v592_v27  ;;  %v1180_v32 = vadd.f32 %v1179_v29, %v1178_v28  ;;  %v1226_v33 = vpop.f32.mrb[15].mxu1  ;;  %v702_v57 = vsub.s32 4, %v701_v56 }
 0x132   : > { %v1227_v34 = vadd.f32 %v1226_v33, %v1225_v30 }
 0x133   : > { %v597_v35 = vadd.f32 %v1180_v32, %v507_v63  ;;  %v1181_v36 = vpop.f32.mrb[16].mxu0  ;;  %1246 = vmatmul.mubr.msk.f32.gmra.mrb[22].mxu0 %vm704_vm2, %v682_v31  ;;  %v703_v58 = vrot.slane %v1707_v41, %v702_v57 }
 0x134   : > { %v1182_v37 = vpop.f32.mrb[17].mxu0  ;;  %v1228_v38 = vpop.f32.mrb[16].mxu1  ;;  %1248 = vmatprep.mubr.msk.f32.mxu0 %vm1417_vm1, %v1416_v40 }
 0x135   : > { %v687_v39 = vadd.f32 %v1227_v34, %v597_v35  ;;  %v1183_v42 = vadd.f32 %v1182_v37, %v1181_v36  ;;  %v1229_v43 = vpop.f32.mrb[17].mxu1 }
 0x136   : > { %v1230_v44 = vadd.f32 %v1229_v43, %v1228_v38 }
 0x137   : > { %v602_v45 = vadd.f32 %v1183_v42, %v512_v6  ;;  %v1184_v46 = vpop.f32.mrb[18].mxu0  ;;  %1249 = vmatmul.mubr.msk.f32.gmra.mrb[24].mxu0 %vm704_vm2, %v687_v39 }
 0x138   : > { %v1185_v47 = vpop.f32.mrb[19].mxu0  ;;  %v1231_v48 = vpop.f32.mrb[18].mxu1 }
 0x139   : > { %v692_v49 = vadd.f32 %v1230_v44, %v602_v45  ;;  %v1186_v50 = vadd.f32 %v1185_v47, %v1184_v46  ;;  %v1232_v51 = vpop.f32.mrb[19].mxu1 }
 0x13a   : > { %v1233_v52 = vadd.f32 %v1232_v51, %v1231_v48 }
 0x13b   : > { %v607_v53 = vadd.f32 %v1186_v50, %v517_v12  ;;  %1252 = vmatmul.mubr.msk.f32.vlgmr.msra.gmra.mrb[20].mxu1 %vm704_vm2, %v692_v49 }
 0x13c   : > { %1254 = vmatprep.mubr.msk.f32.mxu1 %vm1417_vm1, %v1416_v40 }
 0x13d   : > { %v697_v54 = vadd.f32 %v1233_v52, %v607_v53 }
 0x13f   : > { %1255 = vmatmul.mubr.msk.f32.gmra.mrb[22].mxu1 %vm704_vm2, %v697_v54 }
 0x202   : > { %v790_v59 = vpop.f32.mrb[20].mxu0 }
 0x203   : > { %v1727_v60 = vadd.f32 %v790_v59, %v703_v58  ;;  %v1244_v61 = vpop.f32.mrb[21].mxu0 }
 0x205   : > { %v819_v62 = vmul.f32 0.70710677, %v1727_v60 }
 0x206   : > { %v795_v63 = vpop.f32.mrb[22].mxu0 }
 0x207   : > { %v1730_v0 = vclamps-f32 %v819_v62, 4.0  ;;  %v1732_v1 = vadd.f32 %v795_v63, %v703_v58  ;;  %v1247_v40 = vpop.f32.mrb[23].mxu0 }
 0x209   : > { %v1736_v2 = vmul.f32 %v1730_v0, %v1730_v0  ;;  %v820_v3 = vmul.f32 0.70710677, %v1732_v1 }
 0x20a   : > { %v800_v4 = vpop.f32.mrb[24].mxu0 }
 0x20b   : > { %v879_v41 = vmul.f32 -1.1791603e-07, %v1736_v2  ;;  %v1740_v5 = vclamps-f32 %v820_v3, 4.0  ;;  %v1742_v6 = vadd.f32 %v800_v4, %v703_v58  ;;  %v1250_v7 = vpop.f32.mrb[25].mxu0  ;;  %v839_v8 = vmul.f32 0.00022905065, %v1736_v2 }
 0x20d   : > { %v884_v9 = vadd.f32 2.3547966e-05, %v879_v41  ;;  %v1747_v10 = vmul.f32 %v1740_v5, %v1740_v5  ;;  %v821_v11 = vmul.f32 0.70710677, %v1742_v6  ;;  %v844_v16 = vadd.f32 0.003408291, %v839_v8 }
 0x20e   : > { %v805_v12 = vpop.f32.mrb[20].mxu1 }
 0x20f   : > { %v889_v13 = vmul.f32 %v884_v9, %v1736_v2  ;;  %v880_v14 = vmul.f32 -1.1791603e-07, %v1747_v10  ;;  %v1253_v15 = vpop.f32.mrb[21].mxu1  ;;  %v1752_v17 = vclamps-f32 %v821_v11, 4.0  ;;  %v1754_v18 = vadd.f32 %v805_v12, %v703_v58 }
 0x210   : > { %v840_v20 = vmul.f32 0.00022905065, %v1747_v10  ;;  %v849_v28 = vmul.f32 %v844_v16, %v1736_v2 }
 0x211   : > { %v894_v19 = vadd.f32 0.0010179626, %v889_v13  ;;  %v885_v21 = vadd.f32 2.3547966e-05, %v880_v14  ;;  %v1759_v22 = vmul.f32 %v1752_v17, %v1752_v17  ;;  %v822_v23 = vmul.f32 0.70710677, %v1754_v18 }
 0x212   : > { %v810_v24 = vpop.f32.mrb[22].mxu1  ;;  %v845_v33 = vadd.f32 0.003408291, %v840_v20  ;;  %v854_v38 = vadd.f32 0.050955694, %v849_v28 }
 0x213   : > { %v899_v25 = vmul.f32 %v894_v19, %v1736_v2  ;;  %v1763_v26 = vadd.f32 %v810_v24, %v703_v58  ;;  %v1256_v27 = vpop.f32.mrb[23].mxu1  ;;  %v890_v29 = vmul.f32 %v885_v21, %v1747_v10  ;;  %v881_v30 = vmul.f32 -1.1791603e-07, %v1759_v22 }
 0x214   : > { %v1768_v31 = vclamps-f32 %v822_v23, 4.0  ;;  %v841_v34 = vmul.f32 0.00022905065, %v1759_v22  ;;  %v850_v45 = vmul.f32 %v845_v33, %v1747_v10  ;;  %v859_v50 = vmul.f32 %v854_v38, %v1736_v2 }
 0x215   : > { %v904_v32 = vadd.f32 0.01407047, %v899_v25  ;;  %v895_v35 = vadd.f32 0.0010179626, %v890_v29  ;;  %v886_v36 = vadd.f32 2.3547966e-05, %v881_v30 }
 0x216   : > { %v1776_v43 = vmul.f32 %v1768_v31, %v1768_v31  ;;  %v846_v46 = vadd.f32 0.003408291, %v841_v34  ;;  %v855_v55 = vadd.f32 0.050955694, %v850_v45  ;;  %v823_v57 = vmul.f32 0.70710677, %v1763_v26 }
 0x217   : > { %v909_v37 = vmul.f32 %v904_v32, %v1736_v2  ;;  %v900_v39 = vmul.f32 %v895_v35, %v1747_v10  ;;  %v891_v42 = vmul.f32 %v886_v36, %v1759_v22  ;;  %v864_v40 = vadd.f32 0.18520832, %v859_v50 }
 0x218   : > { %v882_v53 = vmul.f32 -1.1791603e-07, %v1776_v43  ;;  %v851_v56 = vmul.f32 %v846_v46, %v1759_v22  ;;  %v842_v61 = vmul.f32 0.00022905065, %v1776_v43  ;;  %v1790_v41 = vclamps-f32 %v823_v57, 4.0 }
 0x219   : > { %v914_v44 = vadd.f32 0.11098505, %v909_v37  ;;  %v905_v47 = vadd.f32 0.01407047, %v900_v39  ;;  %v896_v48 = vadd.f32 0.0010179626, %v891_v42  ;;  %v860_v8 = vmul.f32 %v855_v55, %v1747_v10 }
 0x21a   : > { %v887_v63 = vadd.f32 2.3547966e-05, %v882_v53  ;;  %v856_v9 = vadd.f32 0.050955694, %v851_v56  ;;  %v847_v14 = vadd.f32 0.003408291, %v842_v61  ;;  %v1796_v15 = vmul.f32 %v1790_v41, %v1790_v41 }
 0x21b   : > { %v919_v49 = vmul.f32 %v914_v44, %v1736_v2  ;;  %v910_v51 = vmul.f32 %v905_v47, %v1747_v10  ;;  %v901_v52 = vmul.f32 %v896_v48, %v1759_v22  ;;  %v869_v19 = vmul.f32 %v864_v40, %v1736_v2 }
 0x21c   : > { %v892_v11 = vmul.f32 %v887_v63, %v1776_v43  ;;  %v865_v23 = vadd.f32 0.18520832, %v860_v8  ;;  %v861_v24 = vmul.f32 %v856_v9, %v1759_v22  ;;  %v883_v27 = vmul.f32 -1.1791603e-07, %v1796_v15 }
 0x21d   : > { %v924_v54 = vadd.f32 0.49746925, %v919_v49  ;;  %v915_v58 = vadd.f32 0.11098505, %v910_v51  ;;  %v906_v59 = vadd.f32 0.01407047, %v901_v52  ;;  %v852_v30 = vmul.f32 %v847_v14, %v1776_v43 }
 0x21e   : > { %v897_v16 = vadd.f32 0.0010179626, %v892_v11  ;;  %v843_v32 = vmul.f32 0.00022905065, %v1796_v15  ;;  %v888_v34 = vadd.f32 2.3547966e-05, %v883_v27  ;;  %v870_v36 = vmul.f32 %v865_v23, %v1747_v10 }
 0x21f   : > { %v929_v62 = vmul.f32 %v924_v54, %v1736_v2  ;;  %v920_v3 = vmul.f32 %v915_v58, %v1747_v10  ;;  %v911_v4 = vmul.f32 %v906_v59, %v1759_v22  ;;  %v874_v2 = vadd.f32 1.1283791, %v869_v19 }
 0x220   : > { %v902_v25 = vmul.f32 %v897_v16, %v1776_v43  ;;  %v866_v37 = vadd.f32 0.18520832, %v861_v24  ;;  %v893_v39 = vmul.f32 %v888_v34, %v1796_v15  ;;  %v857_v44 = vadd.f32 0.050955694, %v852_v30 }
 0x221   : > { %v934_v7 = vadd.f32 1.0, %v929_v62  ;;  %v925_v12 = vadd.f32 0.49746925, %v920_v3  ;;  %v916_v13 = vadd.f32 0.11098505, %v911_v4  ;;  %v939_v48 = vmul.f32 %v1730_v0, %v874_v2 }
 0x222   : > { %v907_v33 = vadd.f32 0.01407047, %v902_v25  ;;  %v848_v45 = vadd.f32 0.003408291, %v843_v32  ;;  %v898_v47 = vadd.f32 0.0010179626, %v893_v39  ;;  %v871_v51 = vmul.f32 %v866_v37, %v1759_v22 }
 0x223   : > { %1398 = vrcp.f32 %v934_v7  ;;  %v930_v20 = vmul.f32 %v925_v12, %v1747_v10  ;;  %v921_v21 = vmul.f32 %v916_v13, %v1759_v22  ;;  %v875_v50 = vadd.f32 1.1283791, %v870_v36 }
 0x224   : > { %v912_v38 = vmul.f32 %v907_v33, %v1776_v43  ;;  %v903_v52 = vmul.f32 %v898_v47, %v1796_v15  ;;  %v862_v54 = vmul.f32 %v857_v44, %v1776_v43  ;;  %v853_v55 = vmul.f32 %v848_v45, %v1796_v15 }
 0x225   : > { %v935_v28 = vadd.f32 1.0, %v930_v20  ;;  %v926_v29 = vadd.f32 0.49746925, %v921_v21  ;;  %v814_v58 = vmul.f32 0.5, %v1727_v60  ;;  %v876_v59 = vadd.f32 1.1283791, %v871_v51 }
 0x226   : > { %v917_v46 = vadd.f32 0.11098505, %v912_v38  ;;  %v908_v57 = vadd.f32 0.01407047, %v903_v52  ;;  %v867_v3 = vadd.f32 0.18520832, %v862_v54 }
 0x227   : > { %1400 = vrcp.f32 %v935_v28  ;;  %v931_v35 = vmul.f32 %v926_v29, %v1759_v22  ;;  %v940_v22 = vmul.f32 %v1740_v5, %v875_v50  ;;  %v858_v4 = vadd.f32 0.050955694, %v853_v55 }
 0x228   : > { %v922_v10 = vmul.f32 %v917_v46, %v1776_v43  ;;  %v913_v62 = vmul.f32 %v908_v57, %v1796_v15  ;;  %v815_v9 = vmul.f32 0.5, %v1732_v1  ;;  %v941_v12 = vmul.f32 %v1752_v17, %v876_v59 }
 0x229   : > { %v936_v42 = vadd.f32 1.0, %v931_v35  ;;  %v872_v14 = vmul.f32 %v867_v3, %v1776_v43  ;;  %v863_v16 = vmul.f32 %v858_v4, %v1796_v15  ;;  %v816_v23 = vmul.f32 0.5, %v1742_v6 }
 0x22a   : > { %v927_v56 = vadd.f32 0.49746925, %v922_v10  ;;  %v918_v8 = vadd.f32 0.11098505, %v913_v62  ;;  %v817_v33 = vmul.f32 0.5, %v1754_v18  ;;  %v818_v38 = vmul.f32 0.5, %v1763_v26 }
 0x22b   : > { %1402 = vrcp.f32 %v936_v42  ;;  %v877_v17 = vadd.f32 1.1283791, %v872_v14  ;;  %v868_v25 = vadd.f32 0.18520832, %v863_v16 }
 0x22c   : > { %v932_v61 = vmul.f32 %v927_v56, %v1776_v43  ;;  %v923_v5 = vmul.f32 %v918_v8, %v1796_v15 }
 0x22d   : > { %v1399_v49 = vpop.eup %1398  ;;  %v942_v43 = vmul.f32 %v1768_v31, %v877_v17  ;;  %v873_v29 = vmul.f32 %v868_v25, %v1796_v15 }
 0x22e   : > { %v949_v53 = vmul.f32 %v1399_v49, %v939_v48  ;;  %v937_v7 = vadd.f32 1.0, %v932_v61  ;;  %v928_v21 = vadd.f32 0.49746925, %v923_v5 }
 0x22f   : > { %v878_v34 = vadd.f32 1.1283791, %v873_v29 }
 0x230   : > { %v954_v0 = vadd.f32 1.0, %v949_v53  ;;  %1404 = vrcp.f32 %v937_v7  ;;  %v933_v1 = vmul.f32 %v928_v21, %v1796_v15 }
 0x231   : > { %v1401_v63 = vpop.eup %1400  ;;  %v943_v35 = vmul.f32 %v1790_v41, %v878_v34 }
 0x232   : > { %v959_v40 = vmul.f32 %v954_v0, %v814_v58  ;;  %v950_v60 = vmul.f32 %v1401_v63, %v940_v22  ;;  %v938_v28 = vadd.f32 1.0, %v933_v1 }
 0x234   : > { %964 = vst [vmem:[%s1821_s13] sm:$0xff] %v959_v40  ;;  %v955_v11 = vadd.f32 1.0, %v950_v60  ;;  %1406 = vrcp.f32 %v938_v28 }
 0x235   : > { %v1403_v13 = vpop.eup %1402 }
 0x236   : > { %v960_v19 = vmul.f32 %v955_v11, %v815_v9  ;;  %v951_v20 = vmul.f32 %v1403_v13, %v941_v12 }
 0x238   : > { %965 = vst [vmem:[%s1821_s13 + $0x8] sm:$0xff] %v960_v19  ;;  %v956_v24 = vadd.f32 1.0, %v951_v20 }
 0x23a   : > { %v961_v27 = vmul.f32 %v956_v24, %v816_v23  ;;  %v1405_v30 = vpop.eup %1404 }
 0x23b   : > { %v952_v32 = vmul.f32 %v1405_v30, %v942_v43 }
 0x23c   : > { %966 = vst [vmem:[%s1821_s13 + $0x10] sm:$0xff] %v961_v27 }
 0x23d   : > { %v957_v6 = vadd.f32 1.0, %v952_v32 }
 0x23e   : > { %v1407_v36 = vpop.eup %1406 }
 0x23f   : > { %v962_v2 = vmul.f32 %v957_v6, %v817_v33  ;;  %v953_v37 = vmul.f32 %v1407_v36, %v943_v35 }
 0x241   : > { %967 = vst [vmem:[%s1821_s13 + $0x18] sm:$0xff] %v962_v2  ;;  %v958_v39 = vadd.f32 1.0, %v953_v37 }
 0x243   : > { %v963_v42 = vmul.f32 %v958_v39, %v818_v38 }
 0x245   : > { %968 = vst [vmem:[%s1821_s13 + $0x20] sm:$0xf] %v963_v42 }
 0x246 PF: > { %s13_s12 = sadd.s32 1, %s1414_s12  }
 0x247   : > { %p10_p4 = scmp.ge.s32.totalorder %s13_s12, 4  }
 0x249   :  { %12 = sbr.rel (!%p10_p4) target bundleno = 1 (0x1), region = 62 }

</bundles_post_ra>
